<compile_context>
chip_gen: v7x
topology: tpu7x:2x2x1
jax: 0.10.0
libtpu: 0.0.40
codegen_flags: <defaults>
</compile_context>

<pallas_src>
import functools

import jax
import jax.numpy as jnp
import numpy as np
from jax.experimental import pallas as pl
from jax.experimental.pallas import tpu as pltpu


def _shift_lanes(v, off):
    """out[:, r] = v[:, r + off] with zero fill at the ends. `off` is static."""
    if off == 0:
        return v
    c, n = v.shape
    z = jnp.zeros((c, abs(off)), v.dtype)
    if off > 0:
        return jnp.concatenate([v[:, off:], z], axis=1)
    return jnp.concatenate([z, v[:, : n + off]], axis=1)


def _bottleneck_kernel(coef_ref, mask_ref,
                       x_ref, lr_ref, llr_ref,
                       w1sx_ref, w2_ref, w3_ref, wll_ref,
                       bn1s_ref, bn1b_ref, bn2s_ref, bn2b_ref, bn3s_ref, bn3b_ref,
                       ox_ref, olr_ref, ollr_ref,
                       *, W, P, Cexp):
    f32 = jnp.float32
    bf16 = jnp.bfloat16

    # F_x_n = relu(bn1(x))                      (channel-major: (Cin, rows))
    t = jnp.maximum(x_ref[...] * bn1s_ref[...] + bn1b_ref[...], 0.0)
    tb = t.astype(bf16)

    # conv1 (1x1) and shortcut_x (1x1) fused: (P+Cexp, Cin) @ (Cin, rows)
    yr = jnp.dot(w1sx_ref[...], tb, preferred_element_type=f32)
    y = yr[:P, :]                         # conv1 output       (P, rows)
    residual = yr[P:, :]                  # shortcut_x output  (Cexp, rows)

    # bn2 -> relu
    y = jnp.maximum(y * bn2s_ref[...] + bn2b_ref[...], 0.0)

    # conv2 (3x3, stride 1, pad 1) as a single im2col matmul:
    # row block g = (dy+1)*3 + (dx+1) holds y shifted by (dy, dx) along the
    # flattened pixel axis, zeroed outside the image via static masks.
    parts = []
    g = 0
    for dy in (-1, 0, 1):
        for dx in (-1, 0, 1):
            shifted = _shift_lanes(y, dy * W + dx)
            parts.append(shifted * mask_ref[g:g + 1, :])
            g += 1
    im2col = jnp.concatenate(parts, axis=0).astype(bf16)           # (9P, rows)
    y = jnp.dot(w2_ref[...], im2col, preferred_element_type=f32)   # (P, rows)

    # bn3 -> relu -> conv3 (1x1)
    y = jnp.maximum(y * bn3s_ref[...] + bn3b_ref[...], 0.0)
    f = jnp.dot(w3_ref[...], y.astype(bf16), preferred_element_type=f32)  # (Cexp, rows)

    # shortcut_l / shortcut_ll fused into one block-diagonal matmul
    lcat = jnp.concatenate([lr_ref[...], llr_ref[...]], axis=0).astype(bf16)
    lp = jnp.dot(wll_ref[...], lcat, preferred_element_type=f32)   # (2*Cexp, rows)
    lr_p = lp[:Cexp, :]
    llr_p = lp[Cexp:, :]

    # x = stepsize*b0*F + a0*residual + a1*last_res + a2*l_last_res
    sb0 = coef_ref[0]       # stepsize * b_0
    a0 = coef_ref[1]
    a1 = coef_ref[2]
    a2 = coef_ref[3]
    x_new = sb0 * f + a0 * residual + a1 * lr_p + a2 * llr_p

    # Dense (Cexp, rows) stores -> full 128-lane vregs, no masked partial vst.
    ox_ref[...] = x_new
    olr_ref[...] = residual      # new last_res
    ollr_ref[...] = lr_p         # new l_last_res


def zeros_bottleneck_forward(x, last_res, l_last_res, params, block_images=None):
    """Fused ZeroSBottleneck forward.  x / last_res / l_last_res are NHWC f32."""
    (w1, w2, w3, wsx, wsl, wsll,
     bn1s, bn1b, bn2s, bn2b, bn3s, bn3b, k, stepsize) = params
    N, H, W, Cin = x.shape
    Clr = last_res.shape[3]
    Cllr = l_last_res.shape[3]
    P = w1.shape[1]
    Cexp = w3.shape[1]

    # Images per grid step: target a lane-dense (>=128) pixel axis per block.
    if block_images is None:
        block_images = min(N, max(1, -(-128 // (H * W))))
        while N % block_images:
            block_images -= 1
    NB = block_images
    rows = NB * H * W
    total = N * H * W
    assert N % NB == 0
    assert rows % 128 == 0 or NB == N, "pixel axis per block must be lane-aligned"
    # TODO(synk): for maps where NB*H*W is not a multiple of 128 (e.g. 7x7
    #             ImageNet stages) pad the pixel axis; re-derive tiling for
    #             v7x's 64 MiB VMEM when scaling to real ImageNet shapes.

    # ---- wrapper-side layout plumbing (XLA) --------------------------------
    def to_cm(a):  # NHWC -> channel-major (C, N*H*W)
        n, h, w, c = a.shape
        return a.reshape(n * h * w, c).T

    x_t = to_cm(x)
    lr_t = to_cm(last_res)
    llr_t = to_cm(l_last_res)

    # Fused / transposed weights (bf16 MXU operands, f32 accumulation in-kernel).
    w1sx_t = jnp.concatenate([w1, wsx], axis=1).T.astype(jnp.bfloat16)    # (P+Cexp, Cin)
    w2_t = w2.reshape(9 * P, w2.shape[3]).T.astype(jnp.bfloat16)          # (P, 9*P)
    w3_t = w3.T.astype(jnp.bfloat16)                                      # (Cexp, P)
    wll = jnp.zeros((Clr + Cllr, 2 * Cexp), jnp.float32)
    wll = wll.at[:Clr, :Cexp].set(wsl)
    wll = wll.at[Clr:, Cexp:].set(wsll)
    wll_t = wll.T.astype(jnp.bfloat16)                                    # (2*Cexp, Clr+Cllr)

    # Folded BN parameters as per-channel columns (broadcast along lanes).
    def col(v, c):
        return jnp.reshape(v, (c, 1)).astype(jnp.float32)

    bn1s_t, bn1b_t = col(bn1s, Cin), col(bn1b, Cin)
    bn2s_t, bn2b_t = col(bn2s, P), col(bn2b, P)
    bn3s_t, bn3b_t = col(bn3s, P), col(bn3b, P)

    # Static 3x3 boundary masks over the flattened pixel axis (dy outer, dx inner,
    # same ordering as the kernel loop and as w2.reshape(9*P, P)).
    pix = np.arange(rows)
    jj = pix % W
    ii = (pix // W) % H
    masks_np = np.zeros((9, rows), np.float32)
    g = 0
    for dy in (-1, 0, 1):
        for dx in (-1, 0, 1):
            ok = (ii + dy >= 0) & (ii + dy < H) & (jj + dx >= 0) & (jj + dx < W)
            masks_np[g] = ok.astype(np.float32)
            g += 1
    masks = jnp.asarray(masks_np)

    # Coefficients derived from k (same formulas as the PyTorch forward).
    b0 = (3.0 * k - 1.0) / (2.0 * k)
    a0 = (3.0 * k + 3.0) / (4.0 * k)
    a1 = -1.0 / k
    a2 = (k + 1.0) / (4.0 * k)
    coef = jnp.stack([stepsize * b0, a0, a1, a2]).astype(jnp.float32)

    kernel = functools.partial(_bottleneck_kernel, W=W, P=P, Cexp=Cexp)

    grid_spec = pltpu.PrefetchScalarGridSpec(
        num_scalar_prefetch=0,
        grid=(N // NB,),
        in_specs=[
            pl.BlockSpec(memory_space=pltpu.MemorySpace.SMEM),           # coef
            pl.BlockSpec((9, rows), lambda n: (0, 0)),                   # conv2 masks
            pl.BlockSpec((Cin, rows), lambda n: (0, n)),                 # x
            pl.BlockSpec((Clr, rows), lambda n: (0, n)),                 # last_res
            pl.BlockSpec((Cllr, rows), lambda n: (0, n)),                # l_last_res
            pl.BlockSpec((P + Cexp, Cin), lambda n: (0, 0)),             # conv1 + shortcut_x
            pl.BlockSpec((P, 9 * P), lambda n: (0, 0)),                  # conv2 (im2col weight)
            pl.BlockSpec((Cexp, P), lambda n: (0, 0)),                   # conv3
            pl.BlockSpec((2 * Cexp, Clr + Cllr), lambda n: (0, 0)),      # shortcut_l / _ll
            pl.BlockSpec((Cin, 1), lambda n: (0, 0)),                    # bn1 scale
            pl.BlockSpec((Cin, 1), lambda n: (0, 0)),                    # bn1 bias
            pl.BlockSpec((P, 1), lambda n: (0, 0)),                      # bn2 scale
            pl.BlockSpec((P, 1), lambda n: (0, 0)),                      # bn2 bias
            pl.BlockSpec((P, 1), lambda n: (0, 0)),                      # bn3 scale
            pl.BlockSpec((P, 1), lambda n: (0, 0)),                      # bn3 bias
        ],
        out_specs=[
            pl.BlockSpec((Cexp, rows), lambda n: (0, n)),
            pl.BlockSpec((Cexp, rows), lambda n: (0, n)),
            pl.BlockSpec((Cexp, rows), lambda n: (0, n)),
        ],
    )
    out_shape = (
        jax.ShapeDtypeStruct((Cexp, total), jnp.float32),
        jax.ShapeDtypeStruct((Cexp, total), jnp.float32),
        jax.ShapeDtypeStruct((Cexp, total), jnp.float32),
    )
    x_t_new, lr_t_new, llr_t_new = pl.pallas_call(
        kernel,
        out_shape=out_shape,
        grid_spec=grid_spec,
        compiler_params=pltpu.CompilerParams(
            dimension_semantics=("parallel",)),   # batch groups are independent
    )(coef, masks, x_t, lr_t, llr_t,
      w1sx_t, w2_t, w3_t, wll_t,
      bn1s_t, bn1b_t, bn2s_t, bn2b_t, bn3s_t, bn3b_t)

    def from_cm(a):  # channel-major -> NHWC
        return a.T.reshape(N, H, W, Cexp)

    # out = [x, last_res, l_last_res, k]  (same ordering as the PyTorch module)
    return from_cm(x_t_new), from_cm(lr_t_new), from_cm(llr_t_new), k


def reference_forward(x, last_res, l_last_res, params):
    """Plain-JAX (f32) reference for validation (same NHWC layout)."""
    (w1, w2, w3, wsx, wsl, wsll,
     bn1s, bn1b, bn2s, bn2b, bn3s, bn3b, k, stepsize) = params
    t = jnp.maximum(x * bn1s + bn1b, 0.0)
    residual = jnp.dot(t, wsx)
    y = jnp.maximum(jnp.dot(t, w1) * bn2s + bn2b, 0.0)
    y = jax.lax.conv_general_dilated(
        y, w2, window_strides=(1, 1), padding=((1, 1), (1, 1)),
        dimension_numbers=('NHWC', 'HWIO', 'NHWC'))
    y = jnp.maximum(y * bn3s + bn3b, 0.0)
    f = jnp.dot(y, w3)
    lr = jnp.dot(last_res, wsl)
    llr = jnp.dot(l_last_res, wsll)
    b0 = (3.0 * k - 1.0) / (2.0 * k)
    a0 = (3.0 * k + 3.0) / (4.0 * k)
    a1 = -1.0 / k
    a2 = (k + 1.0) / (4.0 * k)
    x_new = stepsize * b0 * f + a0 * residual + a1 * lr + a2 * llr
    return x_new, residual, lr, k


if __name__ == "__main__":
    key = jax.random.PRNGKey(0)
    N, H, W = 2, 8, 8
    in_planes, planes, expansion = 16, 8, 4
    Cexp = expansion * planes                  # 32
    last_res_planes, l_last_res_planes = 16, 16
    k_ini = -9.0 / 5.0
    stepsize = 1.0

    keys = jax.random.split(key, 19)
    x = jax.random.normal(keys[0], (N, H, W, in_planes), jnp.float32)
    last_res = jax.random.normal(keys[1], (N, H, W, last_res_planes), jnp.float32)
    l_last_res = jax.random.normal(keys[2], (N, H, W, l_last_res_planes), jnp.float32)

    def bn_params(kg, kb, km, kv, c):
        gamma = jax.random.uniform(kg, (1, c), jnp.float32, 0.5, 1.5)
        beta = 0.1 * jax.random.normal(kb, (1, c), jnp.float32)
        mean = 0.1 * jax.random.normal(km, (1, c), jnp.float32)
        var = jax.random.uniform(kv, (1, c), jnp.float32, 0.5, 1.5)
        scale = gamma / jnp.sqrt(var + 1e-5)
        bias = beta - mean * scale
        return scale, bias

    bn1s, bn1b = bn_params(keys[3], keys[4], keys[5], keys[6], in_planes)
    bn2s, bn2b = bn_params(keys[7], keys[8], keys[9], keys[10], planes)
    bn3s, bn3b = bn_params(keys[11], keys[12], keys[13], keys[14], planes)

    w1 = 0.1 * jax.random.normal(keys[15], (in_planes, planes), jnp.float32)
    w2 = 0.1 * jax.random.normal(keys[16], (3, 3, planes, planes), jnp.float32)
    w3 = 0.1 * jax.random.normal(keys[17], (planes, Cexp), jnp.float32)
    wk = jax.random.split(keys[18], 3)
    wsx = 0.1 * jax.random.normal(wk[0], (in_planes, Cexp), jnp.float32)
    wsl = 0.1 * jax.random.normal(wk[1], (last_res_planes, Cexp), jnp.float32)
    wsll = 0.1 * jax.random.normal(wk[2], (l_last_res_planes, Cexp), jnp.float32)

    k = jnp.float32(k_ini)                     # nn.Parameter uniform(k_ini, k_ini)
    params = (w1, w2, w3, wsx, wsl, wsll,
              bn1s, bn1b, bn2s, bn2b, bn3s, bn3b, k, jnp.float32(stepsize))

    out = zeros_bottleneck_forward(x, last_res, l_last_res, params)
    out = jax.block_until_ready(out)

    ref = reference_forward(x, last_res, l_last_res, params)
    # bf16 MXU operands (f32 accumulation) vs. a pure-f32 reference.
    for o, r in zip(out[:3], ref[:3]):
        err = float(jnp.max(jnp.abs(o - r)))
        assert o.shape == r.shape, (o.shape, r.shape)
        assert jnp.allclose(o, r, atol=3e-2, rtol=3e-2), err

    print("KERNEL_OK")
</pallas_src>

<mosaic_0001>
module attributes {stable_mosaic.version = 11 : i64} {
  func.func @_bottleneck_kernel(%arg0: i32, %arg1: memref<4xf32, #tpu.memory_space<smem>>, %arg2: memref<9x128xf32, #tpu.memory_space<vmem>>, %arg3: memref<16x128xf32, #tpu.memory_space<vmem>>, %arg4: memref<16x128xf32, #tpu.memory_space<vmem>>, %arg5: memref<16x128xf32, #tpu.memory_space<vmem>>, %arg6: memref<40x16xbf16, #tpu.memory_space<vmem>>, %arg7: memref<8x72xbf16, #tpu.memory_space<vmem>>, %arg8: memref<32x8xbf16, #tpu.memory_space<vmem>>, %arg9: memref<64x32xbf16, #tpu.memory_space<vmem>>, %arg10: memref<16x1xf32, #tpu.memory_space<vmem>>, %arg11: memref<16x1xf32, #tpu.memory_space<vmem>>, %arg12: memref<8x1xf32, #tpu.memory_space<vmem>>, %arg13: memref<8x1xf32, #tpu.memory_space<vmem>>, %arg14: memref<8x1xf32, #tpu.memory_space<vmem>>, %arg15: memref<8x1xf32, #tpu.memory_space<vmem>>, %arg16: memref<32x128xf32, #tpu.memory_space<vmem>>, %arg17: memref<32x128xf32, #tpu.memory_space<vmem>>, %arg18: memref<32x128xf32, #tpu.memory_space<vmem>>) attributes {dimension_semantics = [#tpu.dimension_semantics<parallel>], iteration_bounds = array<i64: 1>, scalar_prefetch = 0 : i64, scratch_operands = 0 : i64, tpu.core_type = #tpu.core_type<tc>, window_params = [{transform_indices = @transform_0, window_bounds = array<i64: 4>}, {pipeline_mode = #tpu.pipeline_mode<synchronous>, transform_indices = @transform_1, window_bounds = array<i64: 9, 128>}, {transform_indices = @transform_2, window_bounds = array<i64: 16, 128>}, {transform_indices = @transform_3, window_bounds = array<i64: 16, 128>}, {transform_indices = @transform_4, window_bounds = array<i64: 16, 128>}, {pipeline_mode = #tpu.pipeline_mode<synchronous>, transform_indices = @transform_5, window_bounds = array<i64: 40, 16>}, {pipeline_mode = #tpu.pipeline_mode<synchronous>, transform_indices = @transform_6, window_bounds = array<i64: 8, 72>}, {pipeline_mode = #tpu.pipeline_mode<synchronous>, transform_indices = @transform_7, window_bounds = array<i64: 32, 8>}, {pipeline_mode = #tpu.pipeline_mode<synchronous>, transform_indices = @transform_8, window_bounds = array<i64: 64, 32>}, {pipeline_mode = #tpu.pipeline_mode<synchronous>, transform_indices = @transform_9, window_bounds = array<i64: 16, 1>}, {pipeline_mode = #tpu.pipeline_mode<synchronous>, transform_indices = @transform_10, window_bounds = array<i64: 16, 1>}, {pipeline_mode = #tpu.pipeline_mode<synchronous>, transform_indices = @transform_11, window_bounds = array<i64: 8, 1>}, {pipeline_mode = #tpu.pipeline_mode<synchronous>, transform_indices = @transform_12, window_bounds = array<i64: 8, 1>}, {pipeline_mode = #tpu.pipeline_mode<synchronous>, transform_indices = @transform_13, window_bounds = array<i64: 8, 1>}, {pipeline_mode = #tpu.pipeline_mode<synchronous>, transform_indices = @transform_14, window_bounds = array<i64: 8, 1>}, {transform_indices = @transform_15, window_bounds = array<i64: 32, 128>}, {transform_indices = @transform_16, window_bounds = array<i64: 32, 128>}, {transform_indices = @transform_17, window_bounds = array<i64: 32, 128>}]} {
    %c0 = arith.constant 0 : index
    %c0_0 = arith.constant 0 : index
    %0 = vector.load %arg3[%c0, %c0_0] : memref<16x128xf32, #tpu.memory_space<vmem>>, vector<16x128xf32>
    %c0_1 = arith.constant 0 : index
    %c0_2 = arith.constant 0 : index
    %1 = vector.load %arg10[%c0_1, %c0_2] : memref<16x1xf32, #tpu.memory_space<vmem>>, vector<16x1xf32>
    %2 = vector.broadcast %1 : vector<16x1xf32> to vector<16x128xf32>
    %3 = arith.mulf %0, %2 : vector<16x128xf32>
    %c0_3 = arith.constant 0 : index
    %c0_4 = arith.constant 0 : index
    %4 = vector.load %arg11[%c0_3, %c0_4] : memref<16x1xf32, #tpu.memory_space<vmem>>, vector<16x1xf32>
    %5 = vector.broadcast %4 : vector<16x1xf32> to vector<16x128xf32>
    %6 = arith.addf %3, %5 : vector<16x128xf32>
    %cst = arith.constant 0.000000e+00 : f32
    %7 = vector.broadcast %cst : f32 to vector<16x128xf32>
    %8 = arith.maximumf %6, %7 : vector<16x128xf32>
    %9 = arith.truncf %8 : vector<16x128xf32> to vector<16x128xbf16>
    %c0_5 = arith.constant 0 : index
    %c0_6 = arith.constant 0 : index
    %10 = vector.load %arg6[%c0_5, %c0_6] : memref<40x16xbf16, #tpu.memory_space<vmem>>, vector<40x16xbf16>
    %cst_7 = arith.constant dense<0.000000e+00> : vector<40x128xf32>
    %11 = tpu.matmul %10, %9, %cst_7 {dimension_numbers = #tpu.dot_dimension_numbers<[1], [0], [0], [1], [0, 0, 1, 1], [], []>} : vector<40x16xbf16>, vector<16x128xbf16>, vector<40x128xf32> -> vector<40x128xf32>
    %12 = vector.extract_strided_slice %11 {offsets = [0, 0], sizes = [8, 128], strides = [1, 1]} : vector<40x128xf32> to vector<8x128xf32>
    %13 = vector.extract_strided_slice %11 {offsets = [8, 0], sizes = [32, 128], strides = [1, 1]} : vector<40x128xf32> to vector<32x128xf32>
    %c0_8 = arith.constant 0 : index
    %c0_9 = arith.constant 0 : index
    %14 = vector.load %arg12[%c0_8, %c0_9] : memref<8x1xf32, #tpu.memory_space<vmem>>, vector<8x1xf32>
    %15 = vector.broadcast %14 : vector<8x1xf32> to vector<8x128xf32>
    %16 = arith.mulf %12, %15 : vector<8x128xf32>
    %c0_10 = arith.constant 0 : index
    %c0_11 = arith.constant 0 : index
    %17 = vector.load %arg13[%c0_10, %c0_11] : memref<8x1xf32, #tpu.memory_space<vmem>>, vector<8x1xf32>
    %18 = vector.broadcast %17 : vector<8x1xf32> to vector<8x128xf32>
    %19 = arith.addf %16, %18 : vector<8x128xf32>
    %cst_12 = arith.constant 0.000000e+00 : f32
    %20 = vector.broadcast %cst_12 : f32 to vector<8x128xf32>
    %21 = arith.maximumf %19, %20 : vector<8x128xf32>
    %cst_13 = arith.constant 0.000000e+00 : f32
    %22 = vector.broadcast %cst_13 : f32 to vector<8x9xf32>
    %23 = vector.extract_strided_slice %21 {offsets = [0, 0], sizes = [8, 119], strides = [1, 1]} : vector<8x128xf32> to vector<8x119xf32>
    %24 = tpu.concatenate %22, %23 in 1 : vector<8x9xf32>, vector<8x119xf32> -> vector<8x128xf32>
    %c0_14 = arith.constant 0 : index
    %c0_15 = arith.constant 0 : index
    %25 = vector.load %arg2[%c0_14, %c0_15] : memref<9x128xf32, #tpu.memory_space<vmem>>, vector<1x128xf32>
    %26 = vector.broadcast %25 : vector<1x128xf32> to vector<8x128xf32>
    %27 = arith.mulf %24, %26 : vector<8x128xf32>
    %cst_16 = arith.constant 0.000000e+00 : f32
    %28 = vector.broadcast %cst_16 : f32 to vector<8x8xf32>
    %29 = vector.extract_strided_slice %21 {offsets = [0, 0], sizes = [8, 120], strides = [1, 1]} : vector<8x128xf32> to vector<8x120xf32>
    %30 = tpu.concatenate %28, %29 in 1 : vector<8x8xf32>, vector<8x120xf32> -> vector<8x128xf32>
    %c1 = arith.constant 1 : index
    %c0_17 = arith.constant 0 : index
    %31 = vector.load %arg2[%c1, %c0_17] : memref<9x128xf32, #tpu.memory_space<vmem>>, vector<1x128xf32>
    %32 = vector.broadcast %31 : vector<1x128xf32> to vector<8x128xf32>
    %33 = arith.mulf %30, %32 : vector<8x128xf32>
    %cst_18 = arith.constant 0.000000e+00 : f32
    %34 = vector.broadcast %cst_18 : f32 to vector<8x7xf32>
    %35 = vector.extract_strided_slice %21 {offsets = [0, 0], sizes = [8, 121], strides = [1, 1]} : vector<8x128xf32> to vector<8x121xf32>
    %36 = tpu.concatenate %34, %35 in 1 : vector<8x7xf32>, vector<8x121xf32> -> vector<8x128xf32>
    %c2 = arith.constant 2 : index
    %c0_19 = arith.constant 0 : index
    %37 = vector.load %arg2[%c2, %c0_19] : memref<9x128xf32, #tpu.memory_space<vmem>>, vector<1x128xf32>
    %38 = vector.broadcast %37 : vector<1x128xf32> to vector<8x128xf32>
    %39 = arith.mulf %36, %38 : vector<8x128xf32>
    %cst_20 = arith.constant 0.000000e+00 : f32
    %40 = vector.broadcast %cst_20 : f32 to vector<8x1xf32>
    %41 = vector.extract_strided_slice %21 {offsets = [0, 0], sizes = [8, 127], strides = [1, 1]} : vector<8x128xf32> to vector<8x127xf32>
    %42 = tpu.concatenate %40, %41 in 1 : vector<8x1xf32>, vector<8x127xf32> -> vector<8x128xf32>
    %c3 = arith.constant 3 : index
    %c0_21 = arith.constant 0 : index
    %43 = vector.load %arg2[%c3, %c0_21] : memref<9x128xf32, #tpu.memory_space<vmem>>, vector<1x128xf32>
    %44 = vector.broadcast %43 : vector<1x128xf32> to vector<8x128xf32>
    %45 = arith.mulf %42, %44 : vector<8x128xf32>
    %c4 = arith.constant 4 : index
    %c0_22 = arith.constant 0 : index
    %46 = vector.load %arg2[%c4, %c0_22] : memref<9x128xf32, #tpu.memory_space<vmem>>, vector<1x128xf32>
    %47 = vector.broadcast %46 : vector<1x128xf32> to vector<8x128xf32>
    %48 = arith.mulf %21, %47 : vector<8x128xf32>
    %cst_23 = arith.constant 0.000000e+00 : f32
    %49 = vector.broadcast %cst_23 : f32 to vector<8x1xf32>
    %50 = vector.extract_strided_slice %21 {offsets = [0, 1], sizes = [8, 127], strides = [1, 1]} : vector<8x128xf32> to vector<8x127xf32>
    %51 = tpu.concatenate %50, %49 in 1 : vector<8x127xf32>, vector<8x1xf32> -> vector<8x128xf32>
    %c5 = arith.constant 5 : index
    %c0_24 = arith.constant 0 : index
    %52 = vector.load %arg2[%c5, %c0_24] : memref<9x128xf32, #tpu.memory_space<vmem>>, vector<1x128xf32>
    %53 = vector.broadcast %52 : vector<1x128xf32> to vector<8x128xf32>
    %54 = arith.mulf %51, %53 : vector<8x128xf32>
    %cst_25 = arith.constant 0.000000e+00 : f32
    %55 = vector.broadcast %cst_25 : f32 to vector<8x7xf32>
    %56 = vector.extract_strided_slice %21 {offsets = [0, 7], sizes = [8, 121], strides = [1, 1]} : vector<8x128xf32> to vector<8x121xf32>
    %57 = tpu.concatenate %56, %55 in 1 : vector<8x121xf32>, vector<8x7xf32> -> vector<8x128xf32>
    %c6 = arith.constant 6 : index
    %c0_26 = arith.constant 0 : index
    %58 = vector.load %arg2[%c6, %c0_26] : memref<9x128xf32, #tpu.memory_space<vmem>>, vector<1x128xf32>
    %59 = vector.broadcast %58 : vector<1x128xf32> to vector<8x128xf32>
    %60 = arith.mulf %57, %59 : vector<8x128xf32>
    %cst_27 = arith.constant 0.000000e+00 : f32
    %61 = vector.broadcast %cst_27 : f32 to vector<8x8xf32>
    %62 = vector.extract_strided_slice %21 {offsets = [0, 8], sizes = [8, 120], strides = [1, 1]} : vector<8x128xf32> to vector<8x120xf32>
    %63 = tpu.concatenate %62, %61 in 1 : vector<8x120xf32>, vector<8x8xf32> -> vector<8x128xf32>
    %c7 = arith.constant 7 : index
    %c0_28 = arith.constant 0 : index
    %64 = vector.load %arg2[%c7, %c0_28] : memref<9x128xf32, #tpu.memory_space<vmem>>, vector<1x128xf32>
    %65 = vector.broadcast %64 : vector<1x128xf32> to vector<8x128xf32>
    %66 = arith.mulf %63, %65 : vector<8x128xf32>
    %cst_29 = arith.constant 0.000000e+00 : f32
    %67 = vector.broadcast %cst_29 : f32 to vector<8x9xf32>
    %68 = vector.extract_strided_slice %21 {offsets = [0, 9], sizes = [8, 119], strides = [1, 1]} : vector<8x128xf32> to vector<8x119xf32>
    %69 = tpu.concatenate %68, %67 in 1 : vector<8x119xf32>, vector<8x9xf32> -> vector<8x128xf32>
    %c8 = arith.constant 8 : index
    %c0_30 = arith.constant 0 : index
    %70 = vector.load %arg2[%c8, %c0_30] : memref<9x128xf32, #tpu.memory_space<vmem>>, vector<1x128xf32>
    %71 = vector.broadcast %70 : vector<1x128xf32> to vector<8x128xf32>
    %72 = arith.mulf %69, %71 : vector<8x128xf32>
    %73 = tpu.concatenate %27, %33, %39, %45, %48, %54, %60, %66, %72 in 0 : vector<8x128xf32>, vector<8x128xf32>, vector<8x128xf32>, vector<8x128xf32>, vector<8x128xf32>, vector<8x128xf32>, vector<8x128xf32>, vector<8x128xf32>, vector<8x128xf32> -> vector<72x128xf32>
    %74 = arith.truncf %73 : vector<72x128xf32> to vector<72x128xbf16>
    %c0_31 = arith.constant 0 : index
    %c0_32 = arith.constant 0 : index
    %75 = vector.load %arg7[%c0_31, %c0_32] : memref<8x72xbf16, #tpu.memory_space<vmem>>, vector<8x72xbf16>
    %cst_33 = arith.constant dense<0.000000e+00> : vector<8x128xf32>
    %76 = tpu.matmul %75, %74, %cst_33 {dimension_numbers = #tpu.dot_dimension_numbers<[1], [0], [0], [1], [0, 0, 1, 1], [], []>} : vector<8x72xbf16>, vector<72x128xbf16>, vector<8x128xf32> -> vector<8x128xf32>
    %c0_34 = arith.constant 0 : index
    %c0_35 = arith.constant 0 : index
    %77 = vector.load %arg14[%c0_34, %c0_35] : memref<8x1xf32, #tpu.memory_space<vmem>>, vector<8x1xf32>
    %78 = vector.broadcast %77 : vector<8x1xf32> to vector<8x128xf32>
    %79 = arith.mulf %76, %78 : vector<8x128xf32>
    %c0_36 = arith.constant 0 : index
    %c0_37 = arith.constant 0 : index
    %80 = vector.load %arg15[%c0_36, %c0_37] : memref<8x1xf32, #tpu.memory_space<vmem>>, vector<8x1xf32>
    %81 = vector.broadcast %80 : vector<8x1xf32> to vector<8x128xf32>
    %82 = arith.addf %79, %81 : vector<8x128xf32>
    %cst_38 = arith.constant 0.000000e+00 : f32
    %83 = vector.broadcast %cst_38 : f32 to vector<8x128xf32>
    %84 = arith.maximumf %82, %83 : vector<8x128xf32>
    %c0_39 = arith.constant 0 : index
    %c0_40 = arith.constant 0 : index
    %85 = vector.load %arg8[%c0_39, %c0_40] : memref<32x8xbf16, #tpu.memory_space<vmem>>, vector<32x8xbf16>
    %86 = arith.truncf %84 : vector<8x128xf32> to vector<8x128xbf16>
    %cst_41 = arith.constant dense<0.000000e+00> : vector<32x128xf32>
    %87 = tpu.matmul %85, %86, %cst_41 {dimension_numbers = #tpu.dot_dimension_numbers<[1], [0], [0], [1], [0, 0, 1, 1], [], []>} : vector<32x8xbf16>, vector<8x128xbf16>, vector<32x128xf32> -> vector<32x128xf32>
    %c0_42 = arith.constant 0 : index
    %c0_43 = arith.constant 0 : index
    %88 = vector.load %arg4[%c0_42, %c0_43] : memref<16x128xf32, #tpu.memory_space<vmem>>, vector<16x128xf32>
    %c0_44 = arith.constant 0 : index
    %c0_45 = arith.constant 0 : index
    %89 = vector.load %arg5[%c0_44, %c0_45] : memref<16x128xf32, #tpu.memory_space<vmem>>, vector<16x128xf32>
    %90 = tpu.concatenate %88, %89 in 0 : vector<16x128xf32>, vector<16x128xf32> -> vector<32x128xf32>
    %91 = arith.truncf %90 : vector<32x128xf32> to vector<32x128xbf16>
    %c0_46 = arith.constant 0 : index
    %c0_47 = arith.constant 0 : index
    %92 = vector.load %arg9[%c0_46, %c0_47] : memref<64x32xbf16, #tpu.memory_space<vmem>>, vector<64x32xbf16>
    %cst_48 = arith.constant dense<0.000000e+00> : vector<64x128xf32>
    %93 = tpu.matmul %92, %91, %cst_48 {dimension_numbers = #tpu.dot_dimension_numbers<[1], [0], [0], [1], [0, 0, 1, 1], [], []>} : vector<64x32xbf16>, vector<32x128xbf16>, vector<64x128xf32> -> vector<64x128xf32>
    %94 = vector.extract_strided_slice %93 {offsets = [0, 0], sizes = [32, 128], strides = [1, 1]} : vector<64x128xf32> to vector<32x128xf32>
    %95 = vector.extract_strided_slice %93 {offsets = [32, 0], sizes = [32, 128], strides = [1, 1]} : vector<64x128xf32> to vector<32x128xf32>
    %c0_49 = arith.constant 0 : index
    %96 = memref.load %arg1[%c0_49] : memref<4xf32, #tpu.memory_space<smem>>
    %c1_50 = arith.constant 1 : index
    %97 = memref.load %arg1[%c1_50] : memref<4xf32, #tpu.memory_space<smem>>
    %c2_51 = arith.constant 2 : index
    %98 = memref.load %arg1[%c2_51] : memref<4xf32, #tpu.memory_space<smem>>
    %c3_52 = arith.constant 3 : index
    %99 = memref.load %arg1[%c3_52] : memref<4xf32, #tpu.memory_space<smem>>
    %100 = vector.broadcast %96 : f32 to vector<32x128xf32>
    %101 = arith.mulf %100, %87 : vector<32x128xf32>
    %102 = vector.broadcast %97 : f32 to vector<32x128xf32>
    %103 = arith.mulf %102, %13 : vector<32x128xf32>
    %104 = arith.addf %101, %103 : vector<32x128xf32>
    %105 = vector.broadcast %98 : f32 to vector<32x128xf32>
    %106 = arith.mulf %105, %94 : vector<32x128xf32>
    %107 = arith.addf %104, %106 : vector<32x128xf32>
    %108 = vector.broadcast %99 : f32 to vector<32x128xf32>
    %109 = arith.mulf %108, %95 : vector<32x128xf32>
    %110 = arith.addf %107, %109 : vector<32x128xf32>
    %c0_53 = arith.constant 0 : index
    %c0_54 = arith.constant 0 : index
    %111 = vector.load %arg16[%c0_53, %c0_54] : memref<32x128xf32, #tpu.memory_space<vmem>>, vector<32x128xf32>
    tpu.vector_store %arg16[%c0_53, %c0_54], %110 {strides = array<i32>} : memref<32x128xf32, #tpu.memory_space<vmem>>, vector<32x128xf32>,
    %c0_55 = arith.constant 0 : index
    %c0_56 = arith.constant 0 : index
    %112 = vector.load %arg17[%c0_55, %c0_56] : memref<32x128xf32, #tpu.memory_space<vmem>>, vector<32x128xf32>
    tpu.vector_store %arg17[%c0_55, %c0_56], %13 {strides = array<i32>} : memref<32x128xf32, #tpu.memory_space<vmem>>, vector<32x128xf32>,
    %c0_57 = arith.constant 0 : index
    %c0_58 = arith.constant 0 : index
    %113 = vector.load %arg18[%c0_57, %c0_58] : memref<32x128xf32, #tpu.memory_space<vmem>>, vector<32x128xf32>
    tpu.vector_store %arg18[%c0_57, %c0_58], %94 {strides = array<i32>} : memref<32x128xf32, #tpu.memory_space<vmem>>, vector<32x128xf32>,
    return
  }
  func.func @transform_0(%arg0: i32) -> i32 {
    %c0_i32 = arith.constant 0 : i32
    %c0_i32_0 = arith.constant 0 : i32
    return %c0_i32 : i32
  }
  func.func @transform_1(%arg0: i32) -> (i32, i32) {
    %c0_i32 = arith.constant 0 : i32
    %c0_i32_0 = arith.constant 0 : i32
    %c0_i32_1 = arith.constant 0 : i32
    return %c0_i32, %c0_i32_0 : i32, i32
  }
  func.func @transform_2(%arg0: i32) -> (i32, i32) {
    %c0_i32 = arith.constant 0 : i32
    %c0_i32_0 = arith.constant 0 : i32
    return %c0_i32, %arg0 : i32, i32
  }
  func.func @transform_3(%arg0: i32) -> (i32, i32) {
    %c0_i32 = arith.constant 0 : i32
    %c0_i32_0 = arith.constant 0 : i32
    return %c0_i32, %arg0 : i32, i32
  }
  func.func @transform_4(%arg0: i32) -> (i32, i32) {
    %c0_i32 = arith.constant 0 : i32
    %c0_i32_0 = arith.constant 0 : i32
    return %c0_i32, %arg0 : i32, i32
  }
  func.func @transform_5(%arg0: i32) -> (i32, i32) {
    %c0_i32 = arith.constant 0 : i32
    %c0_i32_0 = arith.constant 0 : i32
    %c0_i32_1 = arith.constant 0 : i32
    return %c0_i32, %c0_i32_0 : i32, i32
  }
  func.func @transform_6(%arg0: i32) -> (i32, i32) {
    %c0_i32 = arith.constant 0 : i32
    %c0_i32_0 = arith.constant 0 : i32
    %c0_i32_1 = arith.constant 0 : i32
    return %c0_i32, %c0_i32_0 : i32, i32
  }
  func.func @transform_7(%arg0: i32) -> (i32, i32) {
    %c0_i32 = arith.constant 0 : i32
    %c0_i32_0 = arith.constant 0 : i32
    %c0_i32_1 = arith.constant 0 : i32
    return %c0_i32, %c0_i32_0 : i32, i32
  }
  func.func @transform_8(%arg0: i32) -> (i32, i32) {
    %c0_i32 = arith.constant 0 : i32
    %c0_i32_0 = arith.constant 0 : i32
    %c0_i32_1 = arith.constant 0 : i32
    return %c0_i32, %c0_i32_0 : i32, i32
  }
  func.func @transform_9(%arg0: i32) -> (i32, i32) {
    %c0_i32 = arith.constant 0 : i32
    %c0_i32_0 = arith.constant 0 : i32
    %c0_i32_1 = arith.constant 0 : i32
    return %c0_i32, %c0_i32_0 : i32, i32
  }
  func.func @transform_10(%arg0: i32) -> (i32, i32) {
    %c0_i32 = arith.constant 0 : i32
    %c0_i32_0 = arith.constant 0 : i32
    %c0_i32_1 = arith.constant 0 : i32
    return %c0_i32, %c0_i32_0 : i32, i32
  }
  func.func @transform_11(%arg0: i32) -> (i32, i32) {
    %c0_i32 = arith.constant 0 : i32
    %c0_i32_0 = arith.constant 0 : i32
    %c0_i32_1 = arith.constant 0 : i32
    return %c0_i32, %c0_i32_0 : i32, i32
  }
  func.func @transform_12(%arg0: i32) -> (i32, i32) {
    %c0_i32 = arith.constant 0 : i32
    %c0_i32_0 = arith.constant 0 : i32
    %c0_i32_1 = arith.constant 0 : i32
    return %c0_i32, %c0_i32_0 : i32, i32
  }
  func.func @transform_13(%arg0: i32) -> (i32, i32) {
    %c0_i32 = arith.constant 0 : i32
    %c0_i32_0 = arith.constant 0 : i32
    %c0_i32_1 = arith.constant 0 : i32
    return %c0_i32, %c0_i32_0 : i32, i32
  }
  func.func @transform_14(%arg0: i32) -> (i32, i32) {
    %c0_i32 = arith.constant 0 : i32
    %c0_i32_0 = arith.constant 0 : i32
    %c0_i32_1 = arith.constant 0 : i32
    return %c0_i32, %c0_i32_0 : i32, i32
  }
  func.func @transform_15(%arg0: i32) -> (i32, i32) {
    %c0_i32 = arith.constant 0 : i32
    %c0_i32_0 = arith.constant 0 : i32
    return %c0_i32, %arg0 : i32, i32
  }
  func.func @transform_16(%arg0: i32) -> (i32, i32) {
    %c0_i32 = arith.constant 0 : i32
    %c0_i32_0 = arith.constant 0 : i32
    return %c0_i32, %arg0 : i32, i32
  }
  func.func @transform_17(%arg0: i32) -> (i32, i32) {
    %c0_i32 = arith.constant 0 : i32
    %c0_i32_0 = arith.constant 0 : i32
    return %c0_i32, %arg0 : i32, i32
  }
}

</mosaic_0001>

<bundles_post_ra>
// kernel: tpu_custom_call.1
= control target key start
LH: loop header
LB: loop body
LE: loop exit
PB: predicated region body
PF: predicated region fallthrough
CT: control target
= control target key end

     0   :  { %s1169_s0 = inlined_call_operand.vmem [shape: f32[4], index: 0, kind: input, shape index: {}]   ;;  %s1170_s1 = inlined_call_operand.vmem [shape: f32[9,128], index: 1, kind: input, shape index: {}]   ;;  %s1171_s2 = inlined_call_operand.vmem [shape: f32[16,128], index: 2, kind: input, shape index: {}]   ;;  %s1172_s3 = inlined_call_operand.vmem [shape: f32[16,128], index: 3, kind: input, shape index: {}]   ;;  %s1173_s4 = inlined_call_operand.vmem [shape: f32[16,128], index: 4, kind: input, shape index: {}]   ;;  %s1174_s5 = inlined_call_operand.vmem [shape: bf16[40,16], index: 5, kind: input, shape index: {}]   ;;  %s1175_s6 = inlined_call_operand.vmem [shape: bf16[8,72], index: 6, kind: input, shape index: {}]   ;;  %s1176_s7 = inlined_call_operand.vmem [shape: bf16[32,8], index: 7, kind: input, shape index: {}]   ;;  %s1177_s8 = inlined_call_operand.vmem [shape: bf16[64,32], index: 8, kind: input, shape index: {}]   ;;  %s1178_s9 = inlined_call_operand.vmem [shape: f32[16,1], index: 9, kind: input, shape index: {}]   ;;  %s1179_s10 = inlined_call_operand.vmem [shape: f32[16,1], index: 10, kind: input, shape index: {}]   ;;  %s1180_s11 = inlined_call_operand.vmem [shape: f32[8,1], index: 11, kind: input, shape index: {}]   ;;  %s1181_s12 = inlined_call_operand.vmem [shape: f32[8,1], index: 12, kind: input, shape index: {}]   ;;  %s1182_s13 = inlined_call_operand.vmem [shape: f32[8,1], index: 13, kind: input, shape index: {}]   ;;  %s1183_s14 = inlined_call_operand.vmem [shape: f32[8,1], index: 14, kind: input, shape index: {}]   ;;  %s1184_s15 = inlined_call_operand.hbm [shape: f32[32,128], index: 15, kind: output, shape index: {0}]   ;;  %s1185_s16 = inlined_call_operand.hbm [shape: f32[32,128], index: 16, kind: output, shape index: {1}]   ;;  %s1186_s17 = inlined_call_operand.hbm [shape: f32[32,128], index: 17, kind: output, shape index: {2}]  }
   0x1   :  { %1188 = sst [smem:[#allocation12_spill]] %s1169_s0 }
   0x2   :  { %1189 = sst [smem:[#allocation13_spill]] %s1170_s1 }
   0x3   :  { %23 = vsyncpa [#allocation4], 0 }
   0x4   :  { %24 = vsyncpa [#allocation3], 0 }
   0x5   :  { %25 = vsyncpa [#allocation7], 0  ;;  %s1190_s26 = sld [smem:[#allocation12_spill]] }
   0xb   :  { %s32_s27 = sshll.u32 %s1190_s26, 4  ;;  %s33_s27 = int_to_ptr.vmem [resolvable:$true] %s32_s27 }
   0xc   :  { %s770_s28 = scalar_lea.vmem %s33_s27, 16  ;;  %p775_p1 = scmp.lt.s32.totalorder %s33_s27, %s33_s27 }
   0xd   :  { %p771_p0 = scmp.ne.s32.totalorder %s33_s27, %s770_s28  ;;  %p776_p2 = scmp.lt.s32.totalorder %s770_s28, %s770_s28 }
   0xf   :  { %p777_p3 = por %p776_p2, %p775_p1 }
  0x11   :  { %p778_p4 = pnand %p777_p3, %p771_p0 }
  0x13   :  { %781 = shalt.err (!%p778_p4)
}
  0x14   :  { %s854_s29 = smov [#allocation2]  }
  0x15   :  { %35 = dma.vmem_to_smem %s33_s27, 16, %s854_s29, [#allocation4]  }
  0x16   :  { %848 = dma.done.wait [#allocation4], 16  }
  0x17   :  { %849 = vsyncadd [#allocation4], 4294967280 }
  0x18   :  { %67 = sfence }
  0x19   :  { %v85_v0 = vld [vmem:[%s1179_s10] sm:$0xff]  ;;  %v855_v2 = vmov 0   ;;  %v86_v3 = vld [vmem:[%s1179_s10 + $0x8] sm:$0xff]  ;;  %v856_v7 = vmov 0.0   ;;  %vm857_vm0 = vmmov 0   ;;  %vm120_vm1 = vcmask 130048  }
  0x1a   :  { %v71_v1 = vld [vmem:[%s1178_s9] sm:$0xff]  ;;  %760 = vset.pattern.permute.xlu1 %v855_v2  ;;  %759 = vset.pattern.permute.xlu0 %v855_v2  ;;  %v72_v4 = vld [vmem:[%s1178_s9 + $0x8] sm:$0xff]  ;;  %s859_s29 = smov 9   ;;  %s860_s0 = smov 1   ;;  %vm216_vm2 = vcmask 64512   ;;  %vm205_vm3 = vcmask 72704  }
  0x1b   :  { %89 = vperm.xlu1 %760, %v85_v0   ;;  %75 = vperm.xlu0 %759, %v71_v1   ;;  %v193_v5 = vld [vmem:[%s1181_s12] sm:$0xff]  ;;  %v70_v12 = vld [vmem:[%s1171_s2 + $0x8] sm:$0xff]  ;;  %s861_s30 = smov 7   ;;  %s862_s18 = smov 121   ;;  %vm238_vm4 = vcmask 7168   ;;  %vm227_vm5 = vcmask 56320  }
  0x1c   :  { %v186_v6 = vld [vmem:[%s1180_s11] sm:$0xff]  ;;  %696 = vmatprep.subr.bf16.mxu0 %v856_v7  ;;  %710 = vmatprep.subr.bf16.mxu1 %v856_v7  ;;  %s863_s19 = smov 127   ;;  %s864_s1 = smov 119   ;;  %v762_v33 = vld [vmem:[%s1174_s5 + $0x8] sm:$0xff]   ;;  %vm255_vm6 = vcmask 1039360   ;;  %vm266_vm7 = vcmask 990208  }
  0x1d   :  { %698 = vmatprep.mubr.msk.bf16.mxu0 %vm857_vm0, %v856_v7  ;;  %720 = vmatprep.mubr.msk.bf16.mxu1 %vm857_vm0, %v856_v7  ;;  %v69_v8 = vld [vmem:[%s1171_s2] sm:$0xff]  ;;  %s858_s2 = smov 8   ;;  %s865_s20 = smov 120   ;;  %vm288_vm8 = vcmask 973824   ;;  %vm277_vm9 = vcmask 982016   ;;  %vm306_vm10 = vcmask 1043456  }
  0x1e   :  { %v761_v21 = vld [vmem:[%s1174_s5] sm:$0xff]   ;;  %vm302_vm11 = vcmask 588800   ;;  %vm472_vm12 = vcmask 261120  }
  0x1f   :  { %94 = vperm.xlu1 %760, %v86_v3   ;;  %80 = vperm.xlu0 %759, %v72_v4   ;;  %v357_v31 = vld [vmem:[%s1183_s14] sm:$0xff]  ;;  %s1191_s14 = sld [smem:[#allocation13_spill]] }
  0x20   :  { %v350_v32 = vld [vmem:[%s1182_s13] sm:$0xff] }
  0x23   :  { %196 = vperm.xlu1 %760, %v193_v5   ;;  %189 = vperm.xlu0 %759, %v186_v6  }
  0x25   :  { %v653_v34 = vld [vmem:[%s1191_s14 + $0x1] ss:$0 sm:$0xff]  ;;  %v652_v35 = vld [vmem:[%s1191_s14] ss:$0 sm:$0xff]  ;;  %v655_v42 = vld [vmem:[%s1191_s14 + $0x3] ss:$0 sm:$0xff] }
  0x26   :  { %v654_v43 = vld [vmem:[%s1191_s14 + $0x2] ss:$0 sm:$0xff]  ;;  %v656_v51 = vld [vmem:[%s1191_s14 + $0x4] ss:$0 sm:$0xff]  ;;  %v657_v52 = vld [vmem:[%s1191_s14 + $0x5] ss:$0 sm:$0xff] }
  0x27   :  { %v658_v57 = vld [vmem:[%s1191_s14 + $0x6] ss:$0 sm:$0xff]  ;;  %v660_v61 = vld [vmem:[%s1191_s14 + $0x8] ss:$0 sm:$0xff]  ;;  %v659_v62 = vld [vmem:[%s1191_s14 + $0x7] ss:$0 sm:$0xff] }
  0x9a   :  { %v90_v9 = vpop.permute.xlu1 %89  ;;  %v76_v10 = vpop.permute.xlu0 %75 }
  0x9b   :  { %v83_v11 = vmul.f32 %v76_v10, %v69_v8 }
  0x9d   :  { %v97_v14 = vadd.f32 %v90_v9, %v83_v11  ;;  %v301_v11 = vld [vmem:[%s1175_s6] sm:$0xf] }
  0x9e   :  { %v81_v13 = vpop.permute.xlu0 %80  ;;  %v95_v16 = vpop.permute.xlu1 %94 }
  0x9f   :  { %v84_v15 = vmul.f32 %v81_v13, %v70_v12  ;;  %v99_v18 = vmax.f32 %v97_v14, 0.0  ;;  %v438_v12 = vld [vmem:[%s1172_s3] sm:$0xff]  ;;  %v439_v13 = vld [vmem:[%s1172_s3 + $0x8] sm:$0xff] }
  0xa0   :  { %v442_v14 = vpack.c.bf16 %v439_v13, %v438_v12 }
  0xa1   :  { %v98_v17 = vadd.f32 %v95_v16, %v84_v15  ;;  %v441_v15 = vld [vmem:[%s1173_s4 + $0x8] sm:$0xff]  ;;  %v763_v16 = vld [vmem:[%s1174_s5 + $0x10] ss:$0 sps:$4 sm:$0xff]  }
  0xa2   :  { %v190_v22 = vpop.permute.xlu0 %189  ;;  %v197_v26 = vpop.permute.xlu1 %196 }
  0xa3   :  { %v100_v19 = vmax.f32 %v98_v17, 0.0 }
  0xa5   :  { %v101_v20 = vpack.c.bf16 %v100_v19, %v99_v18  ;;  %v764_v18 = vld [vmem:[%s1177_s8] sm:$0xff]   ;;  %v765_v19 = vld [vmem:[%s1177_s8 + $0x8] sm:$0xff]  }
  0xa7   :  { %697 = vmatpush3.bf16.msra.mxu0 %v101_v20  ;;  %v766_v20 = vld [vmem:[%s1176_s7] sm:$0xff]  }
  0xaa   :  { %699 = vmatmul.mubr.msk.bf16.vlgmr.msra.gmra.mrb[0].mxu0 %vm120_vm1, %v761_v21  ;;  %v768_v21 = vld [vmem:[%s1177_s8 + $0x10] sm:$0xff]  }
  0xab   :  { %702 = vmatprep.mubr.msk.bf16.mxu0 %vm857_vm0, %v856_v7 }
  0xb2   :  { %703 = vmatmul.mubr.msk.bf16.gmra.mrb[4].mxu0 %vm120_vm1, %v762_v33 }
  0xb3   :  { %706 = vmatprep.mubr.msk.bf16.mxu0 %vm857_vm0, %v856_v7 }
  0xba   :  { %707 = vmatmul.mubr.msk.bf16.gmra.mrb[8].mxu0 %vm120_vm1, %v763_v16 }
  0xbb   :  { %726 = vmatprep.mubr.msk.bf16.mxu0 %vm216_vm2, %v766_v20 }
 0x17d   :  { %v164_v23 = vpop.f32.mrb[0].mxu0 }
 0x17e   :  { %v192_v24 = vmul.f32 %v190_v22, %v164_v23  ;;  %v700_v25 = vpop.f32.mrb[1].mxu0  ;;  %v769_v22 = vld [vmem:[%s1177_s8 + $0x18] sm:$0xff]  }
 0x17f   :  { %v999_v27 = vpop.f32.mrb[2].mxu0 }
 0x180   :  { %v199_v28 = vadd.f32 %v197_v26, %v192_v24  ;;  %590 = vst [vmem:[#allocation6] sm:$0xff] %v999_v27  ;;  %v701_v29 = vpop.f32.mrb[3].mxu0 }
 0x182   :  { %v200_v30 = vmax.f32 %v199_v28, 0.0 }
 0x184   :  { %213 = vrot.lane.b32.xlu1 %v200_v30, %s858_s2  ;;  %202 = vrot.lane.b32.xlu0 %v200_v30, %s859_s29  ;;  %v251_v58 = vmul.f32 %v656_v51, %v200_v30 }
 0x185   :  { %v1083_v23 = vpop.f32.mrb[4].mxu0 }
 0x186   :  { %591 = vst [vmem:[#allocation6 + $0x8] sm:$0xff] %v1083_v23  ;;  %v704_v24 = vpop.f32.mrb[5].mxu0 }
 0x187   :  { %v1086_v25 = vpop.f32.mrb[6].mxu0 }
 0x188   :  { %235 = vrot.lane.b32.xlu1 %v200_v30, %s860_s0  ;;  %224 = vrot.lane.b32.xlu0 %v200_v30, %s861_s30  ;;  %592 = vst [vmem:[#allocation6 + $0x10] sm:$0xff] %v1086_v25  ;;  %v705_v26 = vpop.f32.mrb[7].mxu0 }
 0x18c   :  { %263 = vrot.lane.b32.xlu1 %v200_v30, %s862_s18  ;;  %252 = vrot.lane.b32.xlu0 %v200_v30, %s863_s19 }
 0x190   :  { %285 = vrot.lane.b32.xlu1 %v200_v30, %s864_s1  ;;  %274 = vrot.lane.b32.xlu0 %v200_v30, %s865_s20 }
 0x194   :  { %360 = vperm.xlu1 %760, %v357_v31   ;;  %353 = vperm.xlu0 %759, %v350_v32  }
 0x1f6   :  { %v214_v36 = vpop.permute.xlu1 %213  ;;  %v203_v37 = vpop.permute.xlu0 %202 }
 0x1f7   :  { %v217_v38 = vsel %vm216_vm2, 0.0, %v214_v36  ;;  %v206_v39 = vsel %vm205_vm3, 0.0, %v203_v37 }
 0x1f8   :  { %v223_v40 = vmul.f32 %v653_v34, %v217_v38  ;;  %v212_v41 = vmul.f32 %v652_v35, %v206_v39  ;;  %v767_v39 = vld [vmem:[%s1176_s7 + $0x8] sm:$0xff]   ;;  %s866_s7 = smov [#allocation6]  }
 0x1f9   :  { %s615_s23 = sshll.u32 %s866_s7, 4  ;;  %s616_s23 = int_to_ptr.vmem [resolvable:$true] %s615_s23 }
 0x1fa   :  { %v236_v44 = vpop.permute.xlu1 %235  ;;  %v225_v45 = vpop.permute.xlu0 %224  ;;  %v296_v46 = vpack.c.bf16 %v223_v40, %v212_v41  ;;  %s782_s24 = scalar_lea.vmem %s616_s23, 512  ;;  %p787_p6 = scmp.lt.s32.totalorder %s616_s23, %s616_s23 }
 0x1fb   :  { %v239_v47 = vsel %vm238_vm4, 0.0, %v236_v44  ;;  %v228_v48 = vsel %vm227_vm5, 0.0, %v225_v45  ;;  %v1095_v40 = vpop.f32.mrb[8].mxu0  ;;  %p783_p5 = scmp.ne.s32.totalorder %s616_s23, %s782_s24  ;;  %p788_p7 = scmp.lt.s32.totalorder %s782_s24, %s782_s24 }
 0x1fc   :  { %v245_v49 = vmul.f32 %v655_v42, %v239_v47  ;;  %v234_v50 = vmul.f32 %v654_v43, %v228_v48  ;;  %711 = vmatpush3.bf16.msra.mxu1 %v296_v46  ;;  %593 = vst [vmem:[#allocation6 + $0x18] sm:$0xff] %v1095_v40  ;;  %v708_v41 = vpop.f32.mrb[9].mxu0 }
 0x1fd   :  { %712 = vmatprep.subr.bf16.mxu1 %v856_v7  ;;  %v183_v42 = vpop.f32.mrb[10].mxu0  ;;  %p789_p8 = por %p788_p7, %p787_p6 }
 0x1fe   :  { %v297_v53 = vpack.c.bf16 %v245_v49, %v234_v50  ;;  %v264_v54 = vpop.permute.xlu1 %263  ;;  %v253_v55 = vpop.permute.xlu0 %252 }
 0x1ff   :  { %v256_v56 = vsel %vm255_vm6, %v253_v55, 0.0  ;;  %v267_v60 = vsel %vm266_vm7, %v264_v54, 0.0  ;;  %v709_v43 = vpop.f32.mrb[11].mxu0  ;;  %p790_p9 = pnand %p789_p8, %p783_p5 }
 0x200   :  { %v262_v59 = vmul.f32 %v657_v52, %v256_v56  ;;  %713 = vmatpush3.bf16.msra.mxu1 %v297_v53  ;;  %v273_v4 = vmul.f32 %v658_v57, %v267_v60 }
 0x201   :  { %714 = vmatprep.subr.bf16.mxu1 %v856_v7 }
 0x202   :  { %v298_v63 = vpack.c.bf16 %v262_v59, %v251_v58  ;;  %v286_v0 = vpop.permute.xlu1 %285  ;;  %v275_v1 = vpop.permute.xlu0 %274 }
 0x203   :  { %v289_v2 = vsel %vm288_vm8, %v286_v0, 0.0  ;;  %v278_v3 = vsel %vm277_vm9, %v275_v1, 0.0 }
 0x204   :  { %v295_v5 = vmul.f32 %v660_v61, %v289_v2  ;;  %v284_v6 = vmul.f32 %v659_v62, %v278_v3  ;;  %715 = vmatpush3.bf16.msra.mxu1 %v298_v63 }
 0x205   :  { %716 = vmatprep.subr.bf16.mxu1 %v856_v7 }
 0x206   :  { %v299_v8 = vpack.c.bf16 %v284_v6, %v273_v4  ;;  %v300_v9 = vpack.c.bf16 %v295_v5, %v295_v5 }
 0x208   :  { %717 = vmatpush3.bf16.msra.mxu1 %v299_v8  ;;  %v308_v10 = vsel %vm306_vm10, %v300_v9, 0 }
 0x209   :  { %718 = vmatprep.subr.bf16.mxu1 %v856_v7  ;;  %v440_v7 = vld [vmem:[%s1173_s4] sm:$0xff] }
 0x20a   :  { %v443_v17 = vpack.c.bf16 %v441_v15, %v440_v7 }
 0x20c   :  { %719 = vmatpush3.bf16.msra.mxu1 %v308_v10 }
 0x20d   :  { %730 = vmatprep.subr.bf16.mxu1 %v442_v14 }
 0x20f   :  { %721 = vmatmul.mubr.msk.bf16.vlgmr.msra.gmra.mrb[0].mxu1 %vm302_vm11, %v301_v11 }
 0x210   :  { %731 = vmatpush3.bf16.msra.mxu1 %v442_v14  ;;  %734 = vmatprep.mubr.msk.bf16.mxu1 %vm472_vm12, %v764_v18 }
 0x211   :  { %732 = vmatprep.subr.bf16.mxu1 %v443_v17 }
 0x213   :  { %v354_v28 = vpop.permute.xlu0 %353  ;;  %v361_v32 = vpop.permute.xlu1 %360 }
 0x214   :  { %733 = vmatpush3.bf16.msra.mxu1 %v443_v17 }
 0x217   :  { %735 = vmatmul.mubr.msk.bf16.vlgmr.msra.gmra.mrb[4].mxu1 %vm472_vm12, %v765_v19 }
 0x218   :  { %738 = vmatprep.mubr.msk.bf16.mxu1 %vm472_vm12, %v768_v21 }
 0x21f   :  { %739 = vmatmul.mubr.msk.bf16.gmra.mrb[8].mxu1 %vm472_vm12, %v769_v22 }
 0x2e2   :  { %v344_v29 = vpop.f32.mrb[0].mxu1 }
 0x2e3   :  { %v356_v30 = vmul.f32 %v354_v28, %v344_v29  ;;  %v722_v31 = vpop.f32.mrb[1].mxu1 }
 0x2e4   :  { %v347_v33 = vpop.f32.mrb[2].mxu1 }
 0x2e5   :  { %v363_v34 = vadd.f32 %v361_v32, %v356_v30  ;;  %v723_v35 = vpop.f32.mrb[3].mxu1 }
 0x2e7   :  { %v364_v36 = vmax.f32 %v363_v34, 0.0 }
 0x2e9   :  { %v369_v37 = vpack.c.bf16 %v364_v36, %v364_v36 }
 0x2ea   :  { %v1098_v44 = vpop.f32.mrb[4].mxu1 }
 0x2eb   :  { %742 = vmatprep.subr.msk.bf16.mxu0 %vm306_vm10, %v369_v37  ;;  %v387_v38 = vsel %vm306_vm10, %v369_v37, 0  ;;  %596 = vst [vmem:[#allocation8 + $0x10] sm:$0xff] %v1098_v44  ;;  %v1101_v45 = vpop.f32.mrb[5].mxu1 }
 0x2ec   :  { %725 = vmatpush3.bf16.msra.mxu0 %v387_v38  ;;  %594 = vst [vmem:[#allocation8] sm:$0xff] %v1101_v45  ;;  %v1104_v46 = vpop.f32.mrb[6].mxu1 }
 0x2ed   :  { %597 = vst [vmem:[#allocation8 + $0x18] sm:$0xff] %v1104_v46  ;;  %v1107_v47 = vpop.f32.mrb[7].mxu1 }
 0x2ee   :  { %595 = vst [vmem:[#allocation8 + $0x8] sm:$0xff] %v1107_v47 }
 0x2ef   :  { %727 = vmatmul.mubr.msk.bf16.vlgmr.msra.gmra.mrb[12].mxu0 %vm216_vm2, %v767_v39 }
 0x2f2   :  { %v740_v48 = vpop.f32.mrb[8].mxu1 }
 0x2f3   :  { %v535_v49 = vpop.f32.mrb[9].mxu1 }
 0x2f4   :  { %v1110_v50 = vpop.f32.mrb[10].mxu1 }
 0x2f5   :  { %v1112_v51 = vpop.f32.mrb[11].mxu1 }
 0x2f6   :  { %793 = shalt.err (!%p790_p9)
}
 0x2f7   :  { %s794_s9 = scalar_lea.hbm %s1185_s16, 512 }
 0x2f8   :  { %p795_p10 = scmp.ne.s32.totalorder %s1185_s16, %s794_s9  ;;  %p798_p11 = scmp.lt.u32.totalorder %s794_s9, %s1185_s16 }
 0x2fa   :  { %p800_p12 = pnand %p798_p11, %p795_p10 }
 0x2fc   :  { %803 = shalt.err (!%p800_p12)
}
 0x2fd   :  { %s867_s13 = smov 128   ;;  %s868_s6 = smov [#allocation8]  }
 0x2fe   :  { %621 = dma.vmem_to_hbm [thread:$0]  %s616_s23, 512, %s1185_s16, [#allocation7], %s867_s13, %s867_s13, %s858_s2  }
 0x2ff   :  { %s627_s29 = sshll.u32 %s868_s6, 4  ;;  %s628_s29 = int_to_ptr.vmem [resolvable:$true] %s627_s29 }
 0x300   :  { %s804_s3 = scalar_lea.vmem %s628_s29, 512  ;;  %p809_p0 = scmp.lt.s32.totalorder %s628_s29, %s628_s29 }
 0x301   :  { %p805_p13 = scmp.ne.s32.totalorder %s628_s29, %s804_s3  ;;  %p810_p1 = scmp.lt.s32.totalorder %s804_s3, %s804_s3 }
 0x303   :  { %p811_p2 = por %p810_p1, %p809_p0 }
 0x305   :  { %p812_p3 = pnand %p811_p2, %p805_p13 }
 0x307   :  { %815 = shalt.err (!%p812_p3)
}
 0x308   :  { %s816_s18 = scalar_lea.hbm %s1186_s17, 512 }
 0x309   :  { %p817_p4 = scmp.ne.s32.totalorder %s1186_s17, %s816_s18  ;;  %p820_p5 = scmp.lt.u32.totalorder %s816_s18, %s1186_s17 }
 0x30b   :  { %p822_p6 = pnand %p820_p5, %p817_p4 }
 0x30d   :  { %825 = shalt.err (!%p822_p6)
}
 0x30e   :  { %633 = dma.vmem_to_hbm [thread:$0]  %s628_s29, 512, %s1186_s17, [#allocation7], %s867_s13, %s867_s13, %s858_s2  }
 0x30f   :  { %s550_s21 = sld [smem:[#allocation2]]  ;;  %s674_s8 = sld [smem:[#allocation2 + $0x1]] }
 0x310   :  { %s675_s22 = sld [smem:[#allocation2 + $0x2]]  ;;  %s676_s7 = sld [smem:[#allocation2 + $0x3]] }
 0x311   :  { %s869_s17 = smov [#allocation5]  }
 0x312   :  { %s603_s23 = sshll.u32 %s869_s17, 4  ;;  %s604_s23 = int_to_ptr.vmem [resolvable:$true] %s603_s23 }
 0x313   :  { %s826_s24 = scalar_lea.vmem %s604_s23, 512  ;;  %p831_p8 = scmp.lt.s32.totalorder %s604_s23, %s604_s23 }
 0x314   :  { %p827_p7 = scmp.ne.s32.totalorder %s604_s23, %s826_s24  ;;  %p832_p9 = scmp.lt.s32.totalorder %s826_s24, %s826_s24 }
 0x315   :  { %v554_v52 = vstv %s550_s21  ;;  %v559_v53 = vstv %s674_s8 }
 0x316   :  { %v568_v55 = vstv %s675_s22  ;;  %v577_v56 = vstv %s676_s7  ;;  %v562_v57 = vmul.f32 %v559_v53, %v1086_v25  ;;  %v560_v60 = vmul.f32 %v559_v53, %v999_v27  ;;  %p833_p10 = por %p832_p9, %p831_p8 }
 0x317   :  { %v561_v61 = vmul.f32 %v559_v53, %v1083_v23  ;;  %v563_v62 = vmul.f32 %v559_v53, %v1095_v40  ;;  %v571_v2 = vmul.f32 %v1098_v44, %v568_v55  ;;  %v580_v4 = vmul.f32 %v740_v48, %v577_v56 }
 0x318   :  { %v569_v8 = vmul.f32 %v568_v55, %v1101_v45  ;;  %v578_v10 = vmul.f32 %v577_v56, %v535_v49  ;;  %v572_v27 = vmul.f32 %v1104_v46, %v568_v55  ;;  %v570_v14 = vmul.f32 %v568_v55, %v1107_v47  ;;  %p834_p11 = pnand %p833_p10, %p827_p7 }
 0x319   :  { %v581_v17 = vmul.f32 %v1110_v50, %v577_v56  ;;  %v579_v20 = vmul.f32 %v577_v56, %v1112_v51 }
 0x3c2   :  { %v728_v54 = vpop.f32.mrb[12].mxu0 }
 0x3c3   :  { %v557_v58 = vmul.f32 %v728_v54, %v554_v52  ;;  %v423_v59 = vpop.f32.mrb[13].mxu0 }
 0x3c4   :  { %v555_v63 = vmul.f32 %v554_v52, %v423_v59  ;;  %v729_v0 = vpop.f32.mrb[14].mxu0 }
 0x3c5   :  { %v566_v1 = vadd.f32 %v562_v57, %v557_v58  ;;  %v558_v3 = vmul.f32 %v729_v0, %v554_v52  ;;  %v426_v5 = vpop.f32.mrb[15].mxu0 }
 0x3c6   :  { %v564_v6 = vadd.f32 %v560_v60, %v555_v63  ;;  %v556_v9 = vmul.f32 %v554_v52, %v426_v5 }
 0x3c7   :  { %v575_v11 = vadd.f32 %v571_v2, %v566_v1  ;;  %v567_v12 = vadd.f32 %v563_v62, %v558_v3 }
 0x3c8   :  { %v573_v13 = vadd.f32 %v569_v8, %v564_v6  ;;  %v565_v7 = vadd.f32 %v561_v61, %v556_v9 }
 0x3c9   :  { %v584_v15 = vadd.f32 %v580_v4, %v575_v11  ;;  %v576_v16 = vadd.f32 %v572_v27, %v567_v12 }
 0x3ca   :  { %v582_v18 = vadd.f32 %v578_v10, %v573_v13  ;;  %v574_v19 = vadd.f32 %v570_v14, %v565_v7 }
 0x3cb   :  { %588 = vst [vmem:[#allocation5 + $0x10] sm:$0xff] %v584_v15  ;;  %v585_v21 = vadd.f32 %v581_v17, %v576_v16 }
 0x3cc   :  { %586 = vst [vmem:[#allocation5] sm:$0xff] %v582_v18  ;;  %v583_v22 = vadd.f32 %v579_v20, %v574_v19 }
 0x3cd   :  { %589 = vst [vmem:[#allocation5 + $0x18] sm:$0xff] %v585_v21 }
 0x3ce   :  { %587 = vst [vmem:[#allocation5 + $0x8] sm:$0xff] %v583_v22 }
 0x3cf   :  { %837 = shalt.err (!%p834_p11)
}
 0x3d0   :  { %s838_s9 = scalar_lea.hbm %s1184_s15, 512 }
 0x3d1   :  { %p839_p12 = scmp.ne.s32.totalorder %s1184_s15, %s838_s9  ;;  %p842_p13 = scmp.lt.u32.totalorder %s838_s9, %s1184_s15 }
 0x3d3   :  { %p844_p0 = pnand %p842_p13, %p839_p12 }
 0x3d5   :  { %847 = shalt.err (!%p844_p0)
}
 0x3d6   :  { %609 = dma.vmem_to_hbm [thread:$0]  %s604_s23, 512, %s1184_s15, [#allocation3], %s867_s13, %s867_s13, %s858_s2  }
 0x3d7   :  { %850 = dma.done.wait [#allocation3], 512  }
 0x3d8   :  { %851 = vsyncadd [#allocation3], 4294966784 }
 0x3d9   :  { %852 = dma.done.wait [#allocation7], 1024  }
 0x3da   :  { %853 = vsyncadd [#allocation7], 4294966272 }
 0x3db   :  { %643 = vsyncpa [#allocation3], 1 }
 0x3dc   :  { %644 = vsyncpa [#allocation7], 1 }
 0x3dd   :  { %645 = vsyncpa [#allocation4], 1 }

</bundles_post_ra>
